<compile_context>
chip_gen: v7x
topology: tpu7x:2x2x1
jax: 0.10.0
libtpu: 0.0.40
codegen_flags: <defaults>
</compile_context>

<pallas_src>
import jax
import jax.numpy as jnp
from jax.experimental import pallas as pl
from jax.experimental.pallas import tpu as pltpu


def _round_up(x, m):
    return ((x + m - 1) // m) * m


def decoder_kernel(z_ref, w1_ref, b1_ref, w2_ref, b2_ref, out_ref):
    # Transposed orientation: batch rides the lane (last) axis.
    #   z_ref : [L, TB]    w1_ref: [H, L]   b1_ref: [H, 1]
    #   w2_ref: [O, H]     b2_ref: [O, 1]   out_ref: [O, TB]
    h = jnp.dot(w1_ref[...], z_ref[...], preferred_element_type=jnp.float32)
    h = jnp.maximum(h + b1_ref[...], 0.0)
    o = jnp.dot(w2_ref[...], h, preferred_element_type=jnp.float32)
    out_ref[...] = (o + b2_ref[...]).astype(out_ref.dtype)


def decoder_forward(z, w1, b1, w2, b2, *, block_rows=2048,
                    min_rows_for_kernel=4096, force_kernel=False):
    """Decoder forward: out = fc2(relu(fc1(z))).

    z : [B, latent_dim] or [B, T, latent_dim]
    w1: [nhidden, latent_dim]   (torch nn.Linear layout: [out_features, in_features])
    b1: [nhidden, 1]
    w2: [obs_dim, nhidden]
    b2: [obs_dim, 1]
    returns [B, obs_dim] (or [B, T, obs_dim]).
    """
    lead_shape = None
    if z.ndim == 3:
        lead_shape = z.shape[:2]
        z = z.reshape(-1, z.shape[-1])

    R, L = z.shape
    H = w1.shape[0]
    O = w2.shape[0]

    # Small-problem fallback: custom-call launch + pipeline prologue would dominate.
    if not force_kernel and R < min_rows_for_kernel:
        out = jnp.maximum(z @ w1.T + b1.reshape(1, H), 0.0) @ w2.T + b2.reshape(1, O)
        if lead_shape is not None:
            out = out.reshape(lead_shape + (O,))
        return out

    # Even split of the row axis into >= 2 lane-tiles of 128-multiple width.
    n = max(2, pl.cdiv(R, block_rows))
    TB = _round_up(pl.cdiv(R, n), 128)
    RP = n * TB

    # Batch on the lane axis; pad rows up to RP (padded lanes compute garbage that
    # is sliced off below -- they never touch real outputs).
    z_t = jnp.zeros((L, RP), z.dtype).at[:, :R].set(z.T)

    cost = pl.CostEstimate(
        flops=2 * RP * (L * H + H * O),
        transcendentals=0,
        bytes_accessed=4 * (RP * (L + O) + L * H + H + H * O + O),
    )

    out_t = pl.pallas_call(
        decoder_kernel,
        out_shape=jax.ShapeDtypeStruct((O, RP), z.dtype),
        grid=(n,),
        in_specs=[
            pl.BlockSpec((L, TB), lambda i: (0, i)),    # z tile, lane-dense load
            pl.BlockSpec((H, L), lambda i: (0, 0)),     # w1 resident in VMEM
            pl.BlockSpec((H, 1), lambda i: (0, 0)),     # b1 resident
            pl.BlockSpec((O, H), lambda i: (0, 0)),     # w2 resident
            pl.BlockSpec((O, 1), lambda i: (0, 0)),     # b2 resident
        ],
        out_specs=pl.BlockSpec((O, TB), lambda i: (0, i)),  # lane-dense store
        compiler_params=pltpu.CompilerParams(
            dimension_semantics=("parallel",)),
        cost_estimate=cost,
    )(z_t, w1, b1, w2, b2)

    out = out_t[:, :R].T
    if lead_shape is not None:
        out = out.reshape(lead_shape + (O,))
    return out


def init_decoder_params(key, latent_dim=4, obs_dim=2, nhidden=20):
    """PyTorch nn.Linear default init U(-1/sqrt(fan_in), 1/sqrt(fan_in)),
    stored in torch-native [out_features, in_features] layout (biases as columns)."""
    k1, k2, k3, k4 = jax.random.split(key, 4)
    bound1 = 1.0 / jnp.sqrt(latent_dim)
    bound2 = 1.0 / jnp.sqrt(nhidden)
    w1 = jax.random.uniform(k1, (nhidden, latent_dim), jnp.float32, -bound1, bound1)
    b1 = jax.random.uniform(k2, (nhidden, 1), jnp.float32, -bound1, bound1)
    w2 = jax.random.uniform(k3, (obs_dim, nhidden), jnp.float32, -bound2, bound2)
    b2 = jax.random.uniform(k4, (obs_dim, 1), jnp.float32, -bound2, bound2)
    return w1, b1, w2, b2


if __name__ == "__main__":
    latent_dim, obs_dim, nhidden = 4, 2, 20

    key = jax.random.PRNGKey(0)
    k_params, k_z = jax.random.split(key)
    w1, b1, w2, b2 = init_decoder_params(k_params, latent_dim, obs_dim, nhidden)

    def ref_fn(zz):
        return (jnp.maximum(zz @ w1.T + b1.reshape(1, -1), 0.0) @ w2.T
                + b2.reshape(1, -1))

    # 1) Pallas kernel path (forced); batch not a multiple of 128 -> exercises
    #    lane padding and the >=2-step grid.
    batch = 300
    z = jax.random.normal(k_z, (batch, latent_dim), jnp.float32)
    out = jax.block_until_ready(decoder_forward(z, w1, b1, w2, b2, force_kernel=True))
    assert out.shape == (batch, obs_dim)
    assert jnp.allclose(out, ref_fn(z), atol=1e-5, rtol=1e-5)

    # 2) Pallas kernel path with a folded time axis (latent-ODE decoder usage).
    zt = jax.random.normal(jax.random.PRNGKey(1), (4, 7, latent_dim), jnp.float32)
    out_t = jax.block_until_ready(decoder_forward(zt, w1, b1, w2, b2, force_kernel=True))
    ref_t = ref_fn(zt.reshape(-1, latent_dim)).reshape(4, 7, obs_dim)
    assert out_t.shape == (4, 7, obs_dim)
    assert jnp.allclose(out_t, ref_t, atol=1e-5, rtol=1e-5)

    # 3) Small-problem fallback path (auto-selected: plain fused jnp).
    zs = jax.random.normal(jax.random.PRNGKey(2), (50, latent_dim), jnp.float32)
    out_s = jax.block_until_ready(decoder_forward(zs, w1, b1, w2, b2))
    assert out_s.shape == (50, obs_dim)
    assert jnp.allclose(out_s, ref_fn(zs), atol=1e-5, rtol=1e-5)

    print("KERNEL_OK")
</pallas_src>

<mosaic_0001>
module attributes {stable_mosaic.version = 11 : i64} {
  func.func @decoder_kernel(%arg0: i32, %arg1: memref<4x256xf32, #tpu.memory_space<vmem>>, %arg2: memref<20x4xf32, #tpu.memory_space<vmem>>, %arg3: memref<20x1xf32, #tpu.memory_space<vmem>>, %arg4: memref<2x20xf32, #tpu.memory_space<vmem>>, %arg5: memref<2x1xf32, #tpu.memory_space<vmem>>, %arg6: memref<2x256xf32, #tpu.memory_space<vmem>>) attributes {dimension_semantics = [#tpu.dimension_semantics<parallel>], iteration_bounds = array<i64: 2>, scalar_prefetch = 0 : i64, scratch_operands = 0 : i64, tpu.core_type = #tpu.core_type<tc>, window_params = [{transform_indices = @transform_0, window_bounds = array<i64: 4, 256>}, {pipeline_mode = #tpu.pipeline_mode<synchronous>, transform_indices = @transform_1, window_bounds = array<i64: 20, 4>}, {pipeline_mode = #tpu.pipeline_mode<synchronous>, transform_indices = @transform_2, window_bounds = array<i64: 20, 1>}, {pipeline_mode = #tpu.pipeline_mode<synchronous>, transform_indices = @transform_3, window_bounds = array<i64: 2, 20>}, {pipeline_mode = #tpu.pipeline_mode<synchronous>, transform_indices = @transform_4, window_bounds = array<i64: 2, 1>}, {transform_indices = @transform_5, window_bounds = array<i64: 2, 256>}]} {
    %c0 = arith.constant 0 : index
    %c0_0 = arith.constant 0 : index
    %0 = vector.load %arg2[%c0, %c0_0] : memref<20x4xf32, #tpu.memory_space<vmem>>, vector<20x4xf32>
    %c0_1 = arith.constant 0 : index
    %c0_2 = arith.constant 0 : index
    %1 = vector.load %arg1[%c0_1, %c0_2] : memref<4x256xf32, #tpu.memory_space<vmem>>, vector<4x256xf32>
    %cst = arith.constant dense<0.000000e+00> : vector<20x256xf32>
    %2 = tpu.matmul %0, %1, %cst {dimension_numbers = #tpu.dot_dimension_numbers<[1], [0], [0], [1], [0, 0, 1, 1], [], []>} : vector<20x4xf32>, vector<4x256xf32>, vector<20x256xf32> -> vector<20x256xf32>
    %c0_3 = arith.constant 0 : index
    %c0_4 = arith.constant 0 : index
    %3 = vector.load %arg3[%c0_3, %c0_4] : memref<20x1xf32, #tpu.memory_space<vmem>>, vector<20x1xf32>
    %4 = vector.broadcast %3 : vector<20x1xf32> to vector<20x256xf32>
    %5 = arith.addf %2, %4 : vector<20x256xf32>
    %cst_5 = arith.constant 0.000000e+00 : f32
    %6 = vector.broadcast %cst_5 : f32 to vector<20x256xf32>
    %7 = arith.maximumf %5, %6 : vector<20x256xf32>
    %c0_6 = arith.constant 0 : index
    %c0_7 = arith.constant 0 : index
    %8 = vector.load %arg4[%c0_6, %c0_7] : memref<2x20xf32, #tpu.memory_space<vmem>>, vector<2x20xf32>
    %cst_8 = arith.constant dense<0.000000e+00> : vector<2x256xf32>
    %9 = tpu.matmul %8, %7, %cst_8 {dimension_numbers = #tpu.dot_dimension_numbers<[1], [0], [0], [1], [0, 0, 1, 1], [], []>} : vector<2x20xf32>, vector<20x256xf32>, vector<2x256xf32> -> vector<2x256xf32>
    %c0_9 = arith.constant 0 : index
    %c0_10 = arith.constant 0 : index
    %10 = vector.load %arg5[%c0_9, %c0_10] : memref<2x1xf32, #tpu.memory_space<vmem>>, vector<2x1xf32>
    %11 = vector.broadcast %10 : vector<2x1xf32> to vector<2x256xf32>
    %12 = arith.addf %9, %11 : vector<2x256xf32>
    %c0_11 = arith.constant 0 : index
    %c0_12 = arith.constant 0 : index
    %13 = vector.load %arg6[%c0_11, %c0_12] : memref<2x256xf32, #tpu.memory_space<vmem>>, vector<2x256xf32>
    tpu.vector_store %arg6[%c0_11, %c0_12], %12 {strides = array<i32>} : memref<2x256xf32, #tpu.memory_space<vmem>>, vector<2x256xf32>,
    return
  }
  func.func @transform_0(%arg0: i32) -> (i32, i32) {
    %c0_i32 = arith.constant 0 : i32
    %c0_i32_0 = arith.constant 0 : i32
    return %c0_i32, %arg0 : i32, i32
  }
  func.func @transform_1(%arg0: i32) -> (i32, i32) {
    %c0_i32 = arith.constant 0 : i32
    %c0_i32_0 = arith.constant 0 : i32
    %c0_i32_1 = arith.constant 0 : i32
    return %c0_i32, %c0_i32_0 : i32, i32
  }
  func.func @transform_2(%arg0: i32) -> (i32, i32) {
    %c0_i32 = arith.constant 0 : i32
    %c0_i32_0 = arith.constant 0 : i32
    %c0_i32_1 = arith.constant 0 : i32
    return %c0_i32, %c0_i32_0 : i32, i32
  }
  func.func @transform_3(%arg0: i32) -> (i32, i32) {
    %c0_i32 = arith.constant 0 : i32
    %c0_i32_0 = arith.constant 0 : i32
    %c0_i32_1 = arith.constant 0 : i32
    return %c0_i32, %c0_i32_0 : i32, i32
  }
  func.func @transform_4(%arg0: i32) -> (i32, i32) {
    %c0_i32 = arith.constant 0 : i32
    %c0_i32_0 = arith.constant 0 : i32
    %c0_i32_1 = arith.constant 0 : i32
    return %c0_i32, %c0_i32_0 : i32, i32
  }
  func.func @transform_5(%arg0: i32) -> (i32, i32) {
    %c0_i32 = arith.constant 0 : i32
    %c0_i32_0 = arith.constant 0 : i32
    return %c0_i32, %arg0 : i32, i32
  }
}

</mosaic_0001>

<bundles_post_ra>
// kernel: tpu_custom_call.1
= control target key start
LH: loop header
LB: loop body
LE: loop exit
PB: predicated region body
PF: predicated region fallthrough
CT: control target
= control target key end

     0   :  { %10 = vsyncpa [#allocation3], 0  ;;  %s822_s0 = inlined_call_operand.vmem [shape: f32[4,512], index: 0, kind: input, shape index: {}]   ;;  %s823_s1 = inlined_call_operand.vmem [shape: f32[20,4], index: 1, kind: input, shape index: {}]   ;;  %s824_s2 = inlined_call_operand.vmem [shape: f32[20,1], index: 2, kind: input, shape index: {}]   ;;  %s825_s3 = inlined_call_operand.vmem [shape: f32[2,20], index: 3, kind: input, shape index: {}]   ;;  %s826_s4 = inlined_call_operand.vmem [shape: f32[2,1], index: 4, kind: input, shape index: {}]   ;;  %s827_s5 = inlined_call_operand.hbm [shape: f32[2,512], index: 5, kind: output, shape index: {}]  }
   0x1   :  { %12 = vsyncpa [#allocation3 + $0x1], 0  ;;  %s695_s18 = smov 0   ;;  %s697_s19 = smov 0  }
   0x2   :  { %s699_s20 = smov 0   ;;  %s701_s21 = smov 0  }
   0x3 LB: > { %s716_s22 = sadd.s32 4294967295, %s660_s21   ;;  %s528_s23 = sadd.s32 4294967294, %s660_s21   ;;  %s660_s21 = sphi %s701_s21, %s833_s21   ;;  %s656_s20 = sphi %s699_s20, %s832_s20   ;;  %s652_s19 = sphi %s697_s19, %s831_s19   ;;  %s648_s18 = sphi %s695_s18, %s830_s18  }
   0x4   : > { %s720_s24 = sadd.s32 1, %s660_s21   ;;  %s135_s25 = sadd.s32 1, %s656_s20 }
   0x5   : > { %s132_s26 = ssub.s32 %s660_s21, %s720_s24  ;;  %p145_p0 = scmp.ne.s32.totalorder %s656_s20, %s652_s19 }
   0x6   : > { %p133_p1 = scmp.eq.s32.totalorder %s132_s26, 0  ;;  %p146_p2 = scmp.eq.s32.totalorder %s716_s22, 1 }
   0x7   : > { %p151_p3 = scmp.ne.s32.totalorder %s652_s19, %s648_s18  ;;  %p152_p4 = scmp.eq.s32.totalorder %s528_s23, 1 }
   0x8   : > { %s731_s27 = scalar_select %p133_p1, %s656_s20, %s135_s25  }
   0x9   : > { %p733_p5 = por %p146_p2, %p145_p0  ;;  %p737_p6 = por %p152_p4, %p151_p3 }
   0xa   : > { %p531_p7 = scmp.ge.s32.totalorder %s660_s21, 1  ;;  %p191_p8 = scmp.lt.s32.totalorder %s660_s21, 3 }
   0xc   : > { %p192_p9 = pnand %p531_p7, %p191_p8 }
   0xd   : > { %s533_s30 = sshll.u32 (!%p192_p9), %s716_s22, 1  ;;  %v662_v0 = vmov (!%p192_p9), 0.0   ;;  %v230_v1 = vld [vmem:[%s824_s2] sm:$0xff] (!%p192_p9)  ;;  %v663_v2 = vmov (!%p192_p9), 0   ;;  %v232_v3 = vld [vmem:[%s824_s2 + $0x10] sm:$0xf] (!%p192_p9) }
   0xe   : > { %195 = sbr.rel (%p192_p9) target bundleno = 489 (0x1e9), region = 40  ;;  %p220_p10 = scmp.lt.s32.totalorder (!%p192_p9), %s533_s30, 3  ;;  %329 = vmatprep.mubr.f32.mxu0 (!%p192_p9), %v662_v0  ;;  %435 = vmatprep.mubr.f32.mxu1 (!%p192_p9), %v662_v0  ;;  %v231_v4 = vld [vmem:[%s824_s2 + $0x8] sm:$0xff] (!%p192_p9)  ;;  %v355_v5 = vld [vmem:[%s826_s4] sm:$0x3] (!%p192_p9)  ;;  %vm260_vm0 = vcmask (!%p192_p9), 1043456  }
   0xf   : > { %595 = vset.pattern.permute.xlu0 (!%p192_p9), %v663_v2  ;;  %596 = vset.pattern.permute.xlu1 (!%p192_p9), %v663_v2  ;;  %v226_v8 = vld [vmem:[%s823_s1] sm:$0xff] (!%p192_p9)  ;;  %vm250_vm1 = vcmask (!%p192_p9), 31744   ;;  %v227_v9 = vld [vmem:[%s823_s1 + $0x8] sm:$0xff] (!%p192_p9)  ;;  %v228_v10 = vld [vmem:[%s823_s1 + $0x10] sm:$0xf] (!%p192_p9)  ;;  %vm361_vm2 = vcmask (!%p192_p9), 162816  }
  0x10   : > { %235 = vperm.xlu0 (!%p192_p9), %595, %v230_v1   ;;  %245 = vperm.xlu1 (!%p192_p9), %596, %v232_v3   ;;  %v354_v34 = vld [vmem:[%s825_s3] sm:$0x3] (!%p192_p9)  ;;  %s216_s10 = sand.u32 (!%p192_p9), 1, %s652_s19   ;;  %s549_s12 = sshll.u32 (!%p192_p9), %s716_s22, 6 }
  0x11   : > { %s532_s11 = sshll.u32 (!%p192_p9), %s216_s10, 2  ;;  %s455_s23 = scalar_lea.sflag (!%p192_p9), [#allocation3], %s216_s10 }
  0x12   : > { %s218_s13 = scalar_lea.vmem (!%p192_p9), [#allocation2], %s532_s11  ;;  %s664_s22 = smov (!%p192_p9), [#allocation2]  }
  0x13   : > { %s602_s26 = sshll.u32 (!%p192_p9), %s664_s22, 4  ;;  %s603_s26 = int_to_ptr.vmem [resolvable:$false] %s602_s26 }
  0x14   : > { %240 = vperm.xlu0 (!%p192_p9), %595, %v231_v4   ;;  %358 = vperm.xlu1 (!%p192_p9), %596, %v355_v5  }
  0x15   : > { %s835_s30 = smov (!%p220_p10, %s533_s30), 3 }
  0x16   : > { %s534_s14 = sshll.u32 %s835_s30, 2  ;;  %s604_s30 = scalar_lea.vmem %s603_s26, 128 }
  0x17   : > { %s223_s17 = scalar_lea.vmem %s822_s0, %s534_s14  ;;  %s469_s14 = sshll.u32 %s218_s13, 4  ;;  %s782_s14 = int_to_ptr.vmem [resolvable:$true] %s469_s14 }
  0x18   : > { %v229_v6 = vld [vmem:[%s223_s17] sm:$0xff]  ;;  %s780_s17 = scalar_lea.hbm %s827_s5, %s549_s12  ;;  %s598_s25 = scalar_lea.vmem %s782_s14, 64 }
  0x19   : > { %v249_v7 = vcombine.high %v229_v6, %v229_v6  ;;  %p599_p11 = scmp.ne.s32.totalorder %s782_s14, %s598_s25  ;;  %p605_p0 = scmp.lt.s32.totalorder %s782_s14, %s603_s26 }
  0x1a   : > { %p606_p1 = scmp.lt.s32.totalorder %s604_s30, %s598_s25 }
  0x1b   : > { %535 = vmatprep.subr.msk.mxu0 %vm260_vm0, %v249_v7  ;;  %p600_p12 = pnand %p599_p11, %p733_p5 }
  0x1c   : > { %536 = vmatpush1.msk.msra.mxu0 %vm260_vm0, %v229_v6  ;;  %p607_p2 = por %p606_p1, %p605_p0 }
  0x1d   : > { %537 = vmatmul.mubr.msk.f32.vlgmr.msra.gmra.mrb[0].mxu0 %vm250_vm1, %v226_v8  ;;  %p601_p13 = pneg %p600_p12 }
  0x1e   : > { %335 = vmatprep.mubr.f32.mxu0 %v662_v0 }
  0x1f   : > { %p608_p3 = pnand %p607_p2, %p601_p13 }
  0x21   : > { %538 = vmatmul.mubr.msk.f32.gmra.mrb[2].mxu0 %vm250_vm1, %v227_v9 }
  0x22   : > { %341 = vmatprep.mubr.f32.mxu0 %v662_v0 }
  0x25   : > { %539 = vmatmul.mubr.msk.f32.gmra.mrb[4].mxu0 %vm250_vm1, %v228_v10 }
  0x8f   : > { %v236_v11 = vpop.permute.xlu0 %235  ;;  %v246_v26 = vpop.permute.xlu1 %245 }
  0x93   : > { %v241_v15 = vpop.permute.xlu0 %240  ;;  %v359_v35 = vpop.permute.xlu1 %358 }
  0xf0   : > { %v331_v12 = vpop.f32.mrb[0].mxu0 }
  0xf1   : > { %v333_v13 = vpop.f32.mrb[1].mxu0  ;;  %v332_v14 = vadd.f32 %v331_v12, %v236_v11 }
  0xf2   : > { %v334_v16 = vadd.f32 %v333_v13, %v236_v11 }
  0xf3   : > { %v348_v21 = vmax.f32 %v332_v14, 0.0 }
  0xf4   : > { %v337_v17 = vpop.f32.mrb[2].mxu0  ;;  %v349_v23 = vmax.f32 %v334_v16, 0.0 }
  0xf5   : > { %v338_v18 = vadd.f32 %v337_v17, %v241_v15  ;;  %v339_v19 = vpop.f32.mrb[3].mxu0 }
  0xf6   : > { %v340_v20 = vadd.f32 %v339_v19, %v241_v15 }
  0xf7   : > { %v350_v22 = vmax.f32 %v338_v18, 0.0 }
  0xf8   : > { %v351_v24 = vmax.f32 %v340_v20, 0.0  ;;  %v343_v25 = vpop.f32.mrb[4].mxu0 }
  0xf9   : > { %v345_v27 = vpop.f32.mrb[5].mxu0  ;;  %v552_v28 = vpack.c.bf16 %v350_v22, %v348_v21  ;;  %v344_v31 = vadd.f32 %v343_v25, %v246_v26 }
  0xfa   : > { %v346_v29 = vadd.f32 %v345_v27, %v246_v26  ;;  %v550_v30 = vpack.c.bf16 %v351_v24, %v349_v23 }
  0xfb   : > { %v352_v33 = vmax.f32 %v344_v31, 0.0 }
  0xfc   : > { %v353_v32 = vmax.f32 %v346_v29, 0.0  ;;  %551 = vmatprep.subr.bf16.mxu1 %v550_v30 }
  0xfd   : > { %553 = vmatpush1.bf16.msra.mxu1 %v552_v28 }
  0xfe   : > { %540 = vmatprep.subr.msk.mxu1 %vm260_vm0, %v353_v32 }
 0x101   : > { %541 = vmatpush1.msk.msra.mxu1 %vm260_vm0, %v352_v33 }
 0x102   : > { %542 = vmatmul.mubr.msk.f32.vlgmr.msra.gmra.mrb[0].mxu1 %vm361_vm2, %v354_v34 }
 0x1d5   : > { %v437_v36 = vpop.f32.mrb[0].mxu1 }
 0x1d6   : > { %v438_v37 = vadd.f32 %v437_v36, %v359_v35  ;;  %v439_v38 = vpop.f32.mrb[1].mxu1 }
 0x1d7   : > { %v440_v39 = vadd.f32 %v439_v38, %v359_v35 }
 0x1d9   : > { %v444_v40 = vcombine.low %v438_v37, %v440_v39 }
 0x1db   : > { %543 = vst.sshfl [vmem:[%s218_s13] sm:$0x33 pattern:$0x76325410] %v444_v40 }
 0x1dc   : > { %611 = shalt.err (!%p608_p3)
}
 0x1dd   : > { %s612_s6 = scalar_lea.hbm %s780_s17, 64  ;;  %s616_s9 = scalar_lea.hbm %s827_s5, 128 }
 0x1de   : > { %p613_p4 = scmp.ne.s32.totalorder %s780_s17, %s612_s6  ;;  %p617_p9 = scmp.lt.u32.totalorder %s780_s17, %s827_s5 }
 0x1df   : > { %p618_p10 = scmp.lt.u32.totalorder %s616_s9, %s612_s6  ;;  %p620_p12 = scmp.lt.u32.totalorder %s612_s6, %s780_s17 }
 0x1e0   : > { %p614_p7 = pnand %p613_p4, %p733_p5 }
 0x1e1   : > { %p619_p11 = por %p618_p10, %p617_p9 }
 0x1e2   : > { %p615_p8 = pneg %p614_p7 }
 0x1e3   : > { %p621_p13 = por %p620_p12, %p619_p11 }
 0x1e5   : > { %p622_p0 = pnand %p621_p13, %p615_p8 }
 0x1e7   : > { %625 = shalt.err (!%p622_p0)
}
 0x1e8   : > { %554 = dma.vmem_to_hbm [thread:$0]  (%p733_p5), %s782_s14, 64, %s780_s17, %s455_s23  }
 0x1e9 PF: > { %p560_p1 = scmp.ge.s32.totalorder %s660_s21, 2  ;;  %s481_s12 = sand.u32 1, %s648_s18  }
 0x1ea   : > { %s482_s13 = scalar_lea.sflag [#allocation3], %s481_s12 }
 0x1eb   : > { %p557_p2 = pnand %p560_p1, %p737_p6 }
 0x1ed   : > { %643 = dma.done.wait (!%p557_p2), %s482_s13, 64  }
 0x1ee   : > { %645 = vsyncadd (!%p557_p2), %s482_s13, 4294967232  ;;  %p15_p3 = scmp.ge.s32.totalorder %s720_s24, 4   ;;  %s830_s18 = smov %s652_s19 }
 0x1ef   : > { %s831_s19 = smov %s656_s20  ;;  %s832_s20 = smov %s731_s27 }
 0x1f0   : > { %s833_s21 = smov %s720_s24  ;;  %17 = sbr.rel (!%p15_p3) target bundleno = 3 (0x3), region = 75 }
 0x1f7   :  { %487 = vsyncpa [#allocation3], 1 }
 0x1f8   :  { %489 = vsyncpa [#allocation3 + $0x1], 1 }

</bundles_post_ra>
